<compile_context>
chip_gen: v6e
topology: v6e:2x2x1
jax: 0.10.0
libtpu: 0.0.40
codegen_flags: <defaults>
</compile_context>

<pallas_src>
import functools

import jax
import jax.numpy as jnp
import numpy as np
from jax.experimental import pallas as pl
from jax.experimental.pallas import tpu as pltpu


_LANE_CAP = 2048                    # widest lane-dense view we try (multiple of 128)
_MAX_BLOCK_BYTES = 4 * 1024 * 1024  # per-operand, per-grid-step VMEM tile
_VMEM_LIMIT = 32 * 1024 * 1024      # 3 operands * 2 buffers * 4 MiB = 24 MiB < 32 MiB


def _round_up(x, m):
    return ((x + m - 1) // m) * m


def _pick_lane(n):
    """Largest multiple of 128 (<= _LANE_CAP) that divides n, or 0 if none."""
    for lane in range(_LANE_CAP, 127, -128):
        if n % lane == 0:
            return lane
    return 0


def _choose_block_rows(rows, lane, itemsize):
    """Sublane-aligned block height.

    Caps the per-operand tile at _MAX_BLOCK_BYTES, aims for >= 2 balanced grid
    steps (v7x dual-TensorCore sharding; no almost-empty trailing block).
    """
    bytes_per_row = lane * itemsize
    max_rows = max(8, (_MAX_BLOCK_BYTES // bytes_per_row) // 8 * 8)
    target_steps = max(2, pl.cdiv(rows, max_rows))
    block_rows = min(max_rows, _round_up(pl.cdiv(rows, target_steps), 8))
    if block_rows >= rows:
        return rows  # tiny tensor: single full-extent block (always legal)
    return block_rows


def _add_kernel(y_ref, x_ref, o_ref):
    # Lane-dense elementwise add per grid step (VPU, unmasked stores).
    o_ref[...] = (y_ref[...] + x_ref[...]).astype(o_ref.dtype)


def _fused_kernel(fn, x_ref, o_ref):
    # fn is elementwise: read x once, compute fn(x)+x in-register, write once.
    x = x_ref[...]
    o_ref[...] = (fn(x) + x).astype(o_ref.dtype)


def _pallas_elementwise_call(kernel, operands, out_dtype, *, alias_first=False):
    rows, lane = operands[0].shape
    itemsize = max([np.dtype(o.dtype).itemsize for o in operands]
                   + [np.dtype(out_dtype).itemsize])
    block_rows = _choose_block_rows(rows, lane, itemsize)
    grid = (pl.cdiv(rows, block_rows),)
    n = rows * lane
    bytes_accessed = (sum(n * np.dtype(o.dtype).itemsize for o in operands)
                      + n * np.dtype(out_dtype).itemsize)

    extra = {}
    if alias_first and np.dtype(operands[0].dtype) == np.dtype(out_dtype):
        # fn(x) is a dead temporary after the add: reuse its HBM buffer for the
        # output (lower allocation pressure; XLA elides the copy under jit).
        extra["input_output_aliases"] = {0: 0}

    spec = pl.BlockSpec((block_rows, lane), lambda i: (i, 0))
    return pl.pallas_call(
        kernel,
        out_shape=jax.ShapeDtypeStruct((rows, lane), out_dtype),
        grid=grid,
        in_specs=[spec] * len(operands),
        out_specs=spec,
        compiler_params=pltpu.CompilerParams(
            dimension_semantics=("parallel",),
            vmem_limit_bytes=_VMEM_LIMIT,
        ),
        cost_estimate=pl.CostEstimate(
            flops=2 * n, transcendentals=0, bytes_accessed=bytes_accessed),
        **extra,
    )(*operands)


def _residual_add_flat(yf, xf, out_dtype):
    n = yf.shape[0]
    lane = _pick_lane(n)
    if lane:
        out = _pallas_elementwise_call(
            _add_kernel, (yf.reshape(-1, lane), xf.reshape(-1, lane)),
            out_dtype, alias_first=True)
        return out.reshape(-1)
    # No multiple of 128 divides n: stream the 128-aligned bulk through Pallas
    # and add the (<128-element) tail with plain jnp — no padded HBM copies.
    n_main = (n // 128) * 128
    if n_main == 0:
        return (yf + xf).astype(out_dtype)
    lane = _pick_lane(n_main)
    main = _pallas_elementwise_call(
        _add_kernel,
        (yf[:n_main].reshape(-1, lane), xf[:n_main].reshape(-1, lane)),
        out_dtype, alias_first=True).reshape(-1)
    tail = (yf[n_main:] + xf[n_main:]).astype(out_dtype)
    return jnp.concatenate([main, tail])


def _residual_fused_flat(fn, xf, out_dtype):
    n = xf.shape[0]
    kernel = functools.partial(_fused_kernel, fn)
    lane = _pick_lane(n)
    if lane:
        return _pallas_elementwise_call(
            kernel, (xf.reshape(-1, lane),), out_dtype).reshape(-1)
    n_main = (n // 128) * 128
    if n_main == 0:
        return (fn(xf) + xf).astype(out_dtype)
    lane = _pick_lane(n_main)
    main = _pallas_elementwise_call(
        kernel, (xf[:n_main].reshape(-1, lane),), out_dtype).reshape(-1)
    xt = xf[n_main:]
    tail = (fn(xt) + xt).astype(out_dtype)
    return jnp.concatenate([main, tail])


def residual_add(y, x):
    """Pallas TPU residual addition `y + x` (y = fn(x) already materialized)."""
    assert y.shape == x.shape, "fn(x) must be shape-preserving for a residual add"
    out_dtype = jnp.result_type(y.dtype, x.dtype)  # match torch type promotion
    return _residual_add_flat(jnp.ravel(y), jnp.ravel(x), out_dtype).reshape(x.shape)


def residual_fused(fn, x):
    """Fused residual for elementwise fn: read x once, write fn(x)+x once."""
    res = jax.eval_shape(lambda t: fn(t) + t, jax.ShapeDtypeStruct(x.shape, x.dtype))
    assert res.shape == x.shape, "elementwise fusion requires a shape-preserving fn"
    return _residual_fused_flat(fn, jnp.ravel(x), res.dtype).reshape(x.shape)


class Residual:
    """JAX/Pallas mirror of the PyTorch Residual module: fn(x, **kwargs) + x.

    With elementwise=True, fn is fused into the Pallas kernel body (2N HBM
    bytes).  Otherwise fn runs as ordinary JAX and only the add is a kernel.
    Call under jax.jit so the wrapper reshapes are metadata-only.
    """

    def __init__(self, fn, elementwise=False):
        self.fn = fn
        self.elementwise = elementwise

    def __call__(self, x, **kwargs):
        if self.elementwise:
            fn = (lambda t: self.fn(t, **kwargs)) if kwargs else self.fn
            return residual_fused(fn, x)
        # TODO(synk): non-elementwise fns (attention / conv blocks) run as plain
        # JAX outside the kernel; only the residual add is a Pallas kernel.
        return residual_add(self.fn(x, **kwargs), x)


if __name__ == "__main__":
    key = jax.random.PRNGKey(0)
    fn = lambda t: 0.5 * jnp.tanh(t)

    # Lane-divisible shape (2*4*16*16 = 2048 elements).
    x = jax.random.normal(key, (2, 4, 16, 16), dtype=jnp.float32)
    ref = fn(x) + x

    # Fused elementwise path (x read once, fn(x)+x written once).
    out_fused = jax.block_until_ready(jax.jit(Residual(fn, elementwise=True))(x))
    np.testing.assert_allclose(np.asarray(out_fused), np.asarray(ref),
                               rtol=1e-5, atol=1e-5)

    # Generic path (fn as plain JAX, Pallas residual add with i/o aliasing).
    out_generic = jax.block_until_ready(jax.jit(Residual(fn))(x))
    np.testing.assert_allclose(np.asarray(out_generic), np.asarray(ref),
                               rtol=1e-5, atol=1e-5)

    # Ragged shape (2*4*16*17 = 2176 elements): exercises the no-pad, masked
    # last-block path.
    x2 = jax.random.normal(key, (2, 4, 16, 17), dtype=jnp.float32)
    ref2 = fn(x2) + x2
    out2 = jax.block_until_ready(jax.jit(Residual(fn))(x2))
    np.testing.assert_allclose(np.asarray(out2), np.asarray(ref2),
                               rtol=1e-5, atol=1e-5)

    print("KERNEL_OK")
</pallas_src>

<mosaic_0001>
module attributes {stable_mosaic.version = 11 : i64} {
  func.func @_fused_kernel(%arg0: i32, %arg1: memref<1x2048xf32, #tpu.memory_space<vmem>>, %arg2: memref<1x2048xf32, #tpu.memory_space<vmem>>) attributes {dimension_semantics = [#tpu.dimension_semantics<parallel>], iteration_bounds = array<i64: 1>, scalar_prefetch = 0 : i64, scratch_operands = 0 : i64, tpu.core_type = #tpu.core_type<tc>, window_params = [{transform_indices = @transform_0, window_bounds = array<i64: 1, 2048>}, {transform_indices = @transform_1, window_bounds = array<i64: 1, 2048>}]} {
    %c0 = arith.constant 0 : index
    %c0_0 = arith.constant 0 : index
    %0 = vector.load %arg1[%c0, %c0_0] : memref<1x2048xf32, #tpu.memory_space<vmem>>, vector<1x2048xf32>
    %1 = math.tanh %0 : vector<1x2048xf32>
    %cst = arith.constant 5.000000e-01 : f32
    %2 = vector.broadcast %cst : f32 to vector<1x2048xf32>
    %3 = arith.mulf %2, %1 : vector<1x2048xf32>
    %4 = arith.addf %3, %0 : vector<1x2048xf32>
    %c0_1 = arith.constant 0 : index
    %c0_2 = arith.constant 0 : index
    %5 = vector.load %arg2[%c0_1, %c0_2] : memref<1x2048xf32, #tpu.memory_space<vmem>>, vector<1x2048xf32>
    tpu.vector_store %arg2[%c0_1, %c0_2], %4 {strides = array<i32>} : memref<1x2048xf32, #tpu.memory_space<vmem>>, vector<1x2048xf32>,
    return
  }
  func.func @transform_0(%arg0: i32) -> (i32, i32) {
    %c0_i32 = arith.constant 0 : i32
    %c0_i32_0 = arith.constant 0 : i32
    return %arg0, %c0_i32 : i32, i32
  }
  func.func @transform_1(%arg0: i32) -> (i32, i32) {
    %c0_i32 = arith.constant 0 : i32
    %c0_i32_0 = arith.constant 0 : i32
    return %arg0, %c0_i32 : i32, i32
  }
}

</mosaic_0001>

<bundles_post_ra>
// kernel: _unnamed_function_.1
= control target key start
LH: loop header
LB: loop body
LE: loop exit
PB: predicated region body
PF: predicated region fallthrough
CT: control target
= control target key end

     0   :  { %s48_s0 = inlined_call_operand.vmem [shape: f32[1,2048], index: 0, kind: input, shape index: {}]   ;;  %s49_s1 = inlined_call_operand.vmem [shape: f32[1,2048], index: 1, kind: output, shape index: {}]  }
   0x1   :  { %v8_v0 = vld [vmem:[%s48_s0] sm:$0xff]  ;;  %v9_v1 = vld [vmem:[%s48_s0 + $0x8] sm:$0xff] }
   0x2   :  { %22 = vtanh.f32 %v8_v0 }
   0x3   :  { %24 = vtanh.f32 %v9_v1 }
   0xf   :  { %v23_v2 = vpop.eup %22 }
  0x10   :  { %v25_v3 = vpop.eup %24  ;;  %v12_v4 = vmul.f32 0.5, %v23_v2 }
  0x11   :  { %v13_v5 = vmul.f32 0.5, %v25_v3 }
  0x12   :  { %v14_v6 = vadd.f32 %v12_v4, %v8_v0 }
  0x13   :  { %v15_v7 = vadd.f32 %v13_v5, %v9_v1 }
  0x14   :  { %16 = vst [vmem:[%s49_s1] sm:$0xff] %v14_v6 }
  0x15   :  { %17 = vst [vmem:[%s49_s1 + $0x8] sm:$0xff] %v15_v7 }

</bundles_post_ra>
